<compile_context>
chip_gen: v6e
topology: v6e:2x2x1
jax: 0.10.0
libtpu: 0.0.40
codegen_flags: <defaults>
</compile_context>

<pallas_src>
import jax
import jax.numpy as jnp
from jax.experimental import pallas as pl
from jax.experimental.pallas import tpu as pltpu


# ------------------------------ fused kernel --------------------------------

def make_fused_kernel(num_targets, num_nodes, block_has_down):
    """Build the fused forward kernel.

    Ref layout (grid=(1,), scalar prefetch = target_node_index):
      tgt_ref (SMEM, [B] int32),
      a_ref [N,N], x_ref [N,F],
      w1 [F,H], b1 [1,H], w2 [H,H], b2 [1,H],
      per TCN block: cw1 [Cin,Cout], cb1 [1,Cout], cw2 [Cout,Cout], cb2 [1,Cout]
                     (+ dw [Cin,Cout], db [1,Cout] if Cin != Cout),
      fc_w [Clast,K], fc_b [1,K],
      out_ref [B,K].
    """

    def kernel(tgt_ref, a_ref, x_ref, w1_ref, b1_ref, w2_ref, b2_ref, *rest):
        *blk_refs, fc_w_ref, fc_b_ref, out_ref = rest
        f32 = jnp.float32

        # A_norm resident in VMEM once, reused by both GCN layers.
        a = a_ref[...]

        # --- GCN layer 1: relu(A @ (X @ W1) + b1)  (dropout: eval no-op) ---
        h = jnp.dot(x_ref[...], w1_ref[...], preferred_element_type=f32)
        h = jnp.maximum(jnp.dot(a, h, preferred_element_type=f32) + b1_ref[...], 0.0)

        # --- GCN layer 2: relu(A @ (H @ W2) + b2) ---
        h = jnp.dot(h, w2_ref[...], preferred_element_type=f32)
        h = jnp.maximum(jnp.dot(a, h, preferred_element_type=f32) + b2_ref[...], 0.0)

        # --- in-kernel gather of target rows: one-hot selection matmul (MXU) ---
        row_iota = jax.lax.broadcasted_iota(jnp.int32, (num_targets, num_nodes), 0)
        col_iota = jax.lax.broadcasted_iota(jnp.int32, (num_targets, num_nodes), 1)
        sel = jnp.zeros((num_targets, num_nodes), f32)
        for b in range(num_targets):                       # static, tiny trip count
            sel = jnp.where((row_iota == b) & (col_iota == tgt_ref[b]), 1.0, sel)
        z = jnp.dot(sel, h, preferred_element_type=f32)    # [B, gcn_hidden]

        # --- TemporalConvNet: seq_len == 1 (unsqueeze(2)), so each causal
        #     dilated conv reduces exactly to its last-tap linear map. -------
        i = 0
        for has_down in block_has_down:
            cw1, cb1, cw2, cb2 = blk_refs[i], blk_refs[i + 1], blk_refs[i + 2], blk_refs[i + 3]
            i += 4
            y = jnp.maximum(jnp.dot(z, cw1[...], preferred_element_type=f32) + cb1[...], 0.0)
            y = jnp.maximum(jnp.dot(y, cw2[...], preferred_element_type=f32) + cb2[...], 0.0)
            if has_down:                                   # 1x1 conv on residual path
                dw, db = blk_refs[i], blk_refs[i + 1]
                i += 2
                res = jnp.dot(z, dw[...], preferred_element_type=f32) + db[...]
            else:
                res = z
            z = jnp.maximum(y + res, 0.0)                  # block output: relu(out + res)

        # --- fc head on tcn_out[:, :, -1] (== z, since seq_len == 1) ---
        out_ref[...] = jnp.dot(z, fc_w_ref[...], preferred_element_type=f32) + fc_b_ref[...]

    return kernel


# ------------------------------ call wrapper ---------------------------------

def gc_tcn_forward(params, a_norm, x, target_node_index):
    inputs = [a_norm, x, params.w1, params.b1, params.w2, params.b2]
    block_has_down = []
    for blk in params.blocks:
        inputs += [blk["cw1"], blk["cb1"], blk["cw2"], blk["cb2"]]
        if "dw" in blk:
            inputs += [blk["dw"], blk["db"]]
            block_has_down.append(True)
        else:
            block_has_down.append(False)
    inputs += [params.fc_w, params.fc_b]

    num_targets = int(target_node_index.shape[0])
    num_nodes = int(a_norm.shape[0])
    num_classes = int(params.fc_w.shape[1])
    out_shape = (num_targets, num_classes)

    kernel = make_fused_kernel(num_targets, num_nodes, tuple(block_has_down))

    def _spec(arr):
        nd = arr.ndim
        # block_shape == full array dims (allowed regardless of (8,128) tiling);
        # index_map receives (grid_idx, *scalar_prefetch_refs).
        return pl.BlockSpec(arr.shape, lambda i, tgt, _nd=nd: (0,) * _nd)

    return pl.pallas_call(
        kernel,
        grid_spec=pltpu.PrefetchScalarGridSpec(
            num_scalar_prefetch=1,
            grid=(1,),
            in_specs=[_spec(arr) for arr in inputs],
            out_specs=pl.BlockSpec(out_shape, lambda i, tgt: (0, 0)),
        ),
        out_shape=jax.ShapeDtypeStruct(out_shape, jnp.float32),
        compiler_params=pltpu.CompilerParams(
            dimension_semantics=("arbitrary",)),
    )(target_node_index, *inputs)


# -------------------------- graph preprocessing (hoisted) --------------------

def build_norm_adj(edge_index, num_nodes):
    """Dense D^{-1/2} (A + I) D^{-1/2}, matching PyG GCNConv defaults.
    Computed ONCE per graph, outside the hot forward path (static edge_index)."""
    src = edge_index[0]
    dst = edge_index[1]
    a = jnp.zeros((num_nodes, num_nodes), jnp.float32)
    a = a.at[dst, src].add(1.0)                      # message src -> dst
    a = a + jnp.eye(num_nodes, dtype=jnp.float32)    # self loops
    deg = jnp.sum(a, axis=1)
    d_inv_sqrt = jnp.where(deg > 0, 1.0 / jnp.sqrt(deg), 0.0)
    return a * d_inv_sqrt[:, None] * d_inv_sqrt[None, :]


# -------------------------------- parameters ---------------------------------

class GCTCNParams:
    """All weights pre-packed at init so the hot path is a single pallas_call
    with zero wrapper-side transposes / reshapes / slices:
      - matmul weights stored [in, out], biases [1, out]
      - TCN conv weights stored as their last-tap [in, out] linear map
        (exact for seq_len == 1; weight_norm folded into effective weight)."""

    def __init__(self, key, num_node_features, gcn_hidden, tcn_channels,
                 num_classes, kernel_size=2):
        ks = iter(jax.random.split(key, 64))

        def init(shape, scale=0.1):
            return (scale * jax.random.normal(next(ks), shape)).astype(jnp.float32)

        self.w1 = init((num_node_features, gcn_hidden))
        self.b1 = init((1, gcn_hidden))
        self.w2 = init((gcn_hidden, gcn_hidden))
        self.b2 = init((1, gcn_hidden))

        self.blocks = []
        in_ch = gcn_hidden
        for out_ch in tcn_channels:
            blk = dict(
                cw1=init((in_ch, out_ch)),
                cb1=init((1, out_ch)),
                cw2=init((out_ch, out_ch)),
                cb2=init((1, out_ch)),
            )
            if in_ch != out_ch:          # residual-path downsample 1x1 conv
                blk["dw"] = init((in_ch, out_ch))
                blk["db"] = init((1, out_ch))
            self.blocks.append(blk)
            in_ch = out_ch

        self.fc_w = init((in_ch, num_classes))
        self.fc_b = init((1, num_classes))


# ----------------------------------- main -------------------------------------

if __name__ == "__main__":
    num_nodes = 16
    num_node_features = 4
    gcn_hidden = 32
    tcn_num_channels = [48, 32]   # second block exercises the downsample path too
    num_classes = 8

    key = jax.random.PRNGKey(0)
    k_x, k_p = jax.random.split(key)

    x = jax.random.normal(k_x, (num_nodes, num_node_features), jnp.float32)

    # bidirectional ring graph
    src = jnp.arange(num_nodes, dtype=jnp.int32)
    dst = (src + 1) % num_nodes
    edge_index = jnp.stack(
        [jnp.concatenate([src, dst]), jnp.concatenate([dst, src])], axis=0)

    target_node_index = jnp.array([3, 10], dtype=jnp.int32)

    # Static graph structure: normalized adjacency built once, outside the forward.
    a_norm = build_norm_adj(edge_index, num_nodes)

    params = GCTCNParams(k_p, num_node_features, gcn_hidden,
                         tcn_num_channels, num_classes)

    out = gc_tcn_forward(params, a_norm, x, target_node_index)
    out = jax.block_until_ready(out)
    assert out.shape == (target_node_index.shape[0], num_classes)
    print("KERNEL_OK")
</pallas_src>

<mosaic_0001>
module attributes {stable_mosaic.version = 11 : i64} {
  func.func @kernel(%arg0: i32, %arg1: memref<2xi32, #tpu.memory_space<smem>>, %arg2: memref<16x16xf32, #tpu.memory_space<vmem>>, %arg3: memref<16x4xf32, #tpu.memory_space<vmem>>, %arg4: memref<4x32xf32, #tpu.memory_space<vmem>>, %arg5: memref<1x32xf32, #tpu.memory_space<vmem>>, %arg6: memref<32x32xf32, #tpu.memory_space<vmem>>, %arg7: memref<1x32xf32, #tpu.memory_space<vmem>>, %arg8: memref<32x48xf32, #tpu.memory_space<vmem>>, %arg9: memref<1x48xf32, #tpu.memory_space<vmem>>, %arg10: memref<48x48xf32, #tpu.memory_space<vmem>>, %arg11: memref<1x48xf32, #tpu.memory_space<vmem>>, %arg12: memref<32x48xf32, #tpu.memory_space<vmem>>, %arg13: memref<1x48xf32, #tpu.memory_space<vmem>>, %arg14: memref<48x32xf32, #tpu.memory_space<vmem>>, %arg15: memref<1x32xf32, #tpu.memory_space<vmem>>, %arg16: memref<32x32xf32, #tpu.memory_space<vmem>>, %arg17: memref<1x32xf32, #tpu.memory_space<vmem>>, %arg18: memref<48x32xf32, #tpu.memory_space<vmem>>, %arg19: memref<1x32xf32, #tpu.memory_space<vmem>>, %arg20: memref<32x8xf32, #tpu.memory_space<vmem>>, %arg21: memref<1x8xf32, #tpu.memory_space<vmem>>, %arg22: memref<2x8xf32, #tpu.memory_space<vmem>>) attributes {dimension_semantics = [#tpu.dimension_semantics<arbitrary>], iteration_bounds = array<i64: 1>, scalar_prefetch = 1 : i64, scratch_operands = 0 : i64, tpu.core_type = #tpu.core_type<tc>, window_params = [{pipeline_mode = #tpu.pipeline_mode<synchronous>, transform_indices = @transform_0, window_bounds = array<i64: 16, 16>}, {pipeline_mode = #tpu.pipeline_mode<synchronous>, transform_indices = @transform_1, window_bounds = array<i64: 16, 4>}, {pipeline_mode = #tpu.pipeline_mode<synchronous>, transform_indices = @transform_2, window_bounds = array<i64: 4, 32>}, {pipeline_mode = #tpu.pipeline_mode<synchronous>, transform_indices = @transform_3, window_bounds = array<i64: 1, 32>}, {pipeline_mode = #tpu.pipeline_mode<synchronous>, transform_indices = @transform_4, window_bounds = array<i64: 32, 32>}, {pipeline_mode = #tpu.pipeline_mode<synchronous>, transform_indices = @transform_5, window_bounds = array<i64: 1, 32>}, {pipeline_mode = #tpu.pipeline_mode<synchronous>, transform_indices = @transform_6, window_bounds = array<i64: 32, 48>}, {pipeline_mode = #tpu.pipeline_mode<synchronous>, transform_indices = @transform_7, window_bounds = array<i64: 1, 48>}, {pipeline_mode = #tpu.pipeline_mode<synchronous>, transform_indices = @transform_8, window_bounds = array<i64: 48, 48>}, {pipeline_mode = #tpu.pipeline_mode<synchronous>, transform_indices = @transform_9, window_bounds = array<i64: 1, 48>}, {pipeline_mode = #tpu.pipeline_mode<synchronous>, transform_indices = @transform_10, window_bounds = array<i64: 32, 48>}, {pipeline_mode = #tpu.pipeline_mode<synchronous>, transform_indices = @transform_11, window_bounds = array<i64: 1, 48>}, {pipeline_mode = #tpu.pipeline_mode<synchronous>, transform_indices = @transform_12, window_bounds = array<i64: 48, 32>}, {pipeline_mode = #tpu.pipeline_mode<synchronous>, transform_indices = @transform_13, window_bounds = array<i64: 1, 32>}, {pipeline_mode = #tpu.pipeline_mode<synchronous>, transform_indices = @transform_14, window_bounds = array<i64: 32, 32>}, {pipeline_mode = #tpu.pipeline_mode<synchronous>, transform_indices = @transform_15, window_bounds = array<i64: 1, 32>}, {pipeline_mode = #tpu.pipeline_mode<synchronous>, transform_indices = @transform_16, window_bounds = array<i64: 48, 32>}, {pipeline_mode = #tpu.pipeline_mode<synchronous>, transform_indices = @transform_17, window_bounds = array<i64: 1, 32>}, {pipeline_mode = #tpu.pipeline_mode<synchronous>, transform_indices = @transform_18, window_bounds = array<i64: 32, 8>}, {pipeline_mode = #tpu.pipeline_mode<synchronous>, transform_indices = @transform_19, window_bounds = array<i64: 1, 8>}, {pipeline_mode = #tpu.pipeline_mode<synchronous>, transform_indices = @transform_20, window_bounds = array<i64: 2, 8>}]} {
    %c0 = arith.constant 0 : index
    %c0_0 = arith.constant 0 : index
    %0 = vector.load %arg2[%c0, %c0_0] : memref<16x16xf32, #tpu.memory_space<vmem>>, vector<16x16xf32>
    %c0_1 = arith.constant 0 : index
    %c0_2 = arith.constant 0 : index
    %1 = vector.load %arg3[%c0_1, %c0_2] : memref<16x4xf32, #tpu.memory_space<vmem>>, vector<16x4xf32>
    %c0_3 = arith.constant 0 : index
    %c0_4 = arith.constant 0 : index
    %2 = vector.load %arg4[%c0_3, %c0_4] : memref<4x32xf32, #tpu.memory_space<vmem>>, vector<4x32xf32>
    %cst = arith.constant dense<0.000000e+00> : vector<16x32xf32>
    %3 = tpu.matmul %1, %2, %cst {dimension_numbers = #tpu.dot_dimension_numbers<[1], [0], [0], [1], [0, 0, 1, 1], [], []>} : vector<16x4xf32>, vector<4x32xf32>, vector<16x32xf32> -> vector<16x32xf32>
    %cst_5 = arith.constant dense<0.000000e+00> : vector<16x32xf32>
    %4 = tpu.matmul %0, %3, %cst_5 {dimension_numbers = #tpu.dot_dimension_numbers<[1], [0], [0], [1], [0, 0, 1, 1], [], []>} : vector<16x16xf32>, vector<16x32xf32>, vector<16x32xf32> -> vector<16x32xf32>
    %c0_6 = arith.constant 0 : index
    %c0_7 = arith.constant 0 : index
    %5 = vector.load %arg5[%c0_6, %c0_7] : memref<1x32xf32, #tpu.memory_space<vmem>>, vector<1x32xf32>
    %6 = vector.broadcast %5 : vector<1x32xf32> to vector<16x32xf32>
    %7 = arith.addf %4, %6 : vector<16x32xf32>
    %cst_8 = arith.constant 0.000000e+00 : f32
    %8 = vector.broadcast %cst_8 : f32 to vector<16x32xf32>
    %9 = arith.maximumf %7, %8 : vector<16x32xf32>
    %c0_9 = arith.constant 0 : index
    %c0_10 = arith.constant 0 : index
    %10 = vector.load %arg6[%c0_9, %c0_10] : memref<32x32xf32, #tpu.memory_space<vmem>>, vector<32x32xf32>
    %cst_11 = arith.constant dense<0.000000e+00> : vector<16x32xf32>
    %11 = tpu.matmul %9, %10, %cst_11 {dimension_numbers = #tpu.dot_dimension_numbers<[1], [0], [0], [1], [0, 0, 1, 1], [], []>} : vector<16x32xf32>, vector<32x32xf32>, vector<16x32xf32> -> vector<16x32xf32>
    %cst_12 = arith.constant dense<0.000000e+00> : vector<16x32xf32>
    %12 = tpu.matmul %0, %11, %cst_12 {dimension_numbers = #tpu.dot_dimension_numbers<[1], [0], [0], [1], [0, 0, 1, 1], [], []>} : vector<16x16xf32>, vector<16x32xf32>, vector<16x32xf32> -> vector<16x32xf32>
    %c0_13 = arith.constant 0 : index
    %c0_14 = arith.constant 0 : index
    %13 = vector.load %arg7[%c0_13, %c0_14] : memref<1x32xf32, #tpu.memory_space<vmem>>, vector<1x32xf32>
    %14 = vector.broadcast %13 : vector<1x32xf32> to vector<16x32xf32>
    %15 = arith.addf %12, %14 : vector<16x32xf32>
    %cst_15 = arith.constant 0.000000e+00 : f32
    %16 = vector.broadcast %cst_15 : f32 to vector<16x32xf32>
    %17 = arith.maximumf %15, %16 : vector<16x32xf32>
    %18 = tpu.iota {dimensions = array<i32: 0>} : vector<2x16xi32>
    %19 = tpu.iota {dimensions = array<i32: 1>} : vector<2x16xi32>
    %cst_16 = arith.constant 0.000000e+00 : f32
    %20 = vector.broadcast %cst_16 : f32 to vector<2x16xf32>
    %c0_i32 = arith.constant 0 : i32
    %21 = vector.broadcast %c0_i32 : i32 to vector<2x16xi32>
    %22 = arith.cmpi eq, %18, %21 : vector<2x16xi32>
    %c0_17 = arith.constant 0 : index
    %23 = memref.load %arg1[%c0_17] : memref<2xi32, #tpu.memory_space<smem>>
    %24 = vector.broadcast %23 : i32 to vector<2x16xi32>
    %25 = arith.cmpi eq, %19, %24 : vector<2x16xi32>
    %26 = arith.andi %22, %25 : vector<2x16xi1>
    %cst_18 = arith.constant 1.000000e+00 : f32
    %27 = vector.broadcast %cst_18 : f32 to vector<2x16xf32>
    %28 = arith.select %26, %27, %20 : vector<2x16xi1>, vector<2x16xf32>
    %c1_i32 = arith.constant 1 : i32
    %29 = vector.broadcast %c1_i32 : i32 to vector<2x16xi32>
    %30 = arith.cmpi eq, %18, %29 : vector<2x16xi32>
    %c1 = arith.constant 1 : index
    %31 = memref.load %arg1[%c1] : memref<2xi32, #tpu.memory_space<smem>>
    %32 = vector.broadcast %31 : i32 to vector<2x16xi32>
    %33 = arith.cmpi eq, %19, %32 : vector<2x16xi32>
    %34 = arith.andi %30, %33 : vector<2x16xi1>
    %cst_19 = arith.constant 1.000000e+00 : f32
    %35 = vector.broadcast %cst_19 : f32 to vector<2x16xf32>
    %36 = arith.select %34, %35, %28 : vector<2x16xi1>, vector<2x16xf32>
    %cst_20 = arith.constant dense<0.000000e+00> : vector<2x32xf32>
    %37 = tpu.matmul %36, %17, %cst_20 {dimension_numbers = #tpu.dot_dimension_numbers<[1], [0], [0], [1], [0, 0, 1, 1], [], []>} : vector<2x16xf32>, vector<16x32xf32>, vector<2x32xf32> -> vector<2x32xf32>
    %c0_21 = arith.constant 0 : index
    %c0_22 = arith.constant 0 : index
    %38 = vector.load %arg8[%c0_21, %c0_22] : memref<32x48xf32, #tpu.memory_space<vmem>>, vector<32x48xf32>
    %cst_23 = arith.constant dense<0.000000e+00> : vector<2x48xf32>
    %39 = tpu.matmul %37, %38, %cst_23 {dimension_numbers = #tpu.dot_dimension_numbers<[1], [0], [0], [1], [0, 0, 1, 1], [], []>} : vector<2x32xf32>, vector<32x48xf32>, vector<2x48xf32> -> vector<2x48xf32>
    %c0_24 = arith.constant 0 : index
    %c0_25 = arith.constant 0 : index
    %40 = vector.load %arg9[%c0_24, %c0_25] : memref<1x48xf32, #tpu.memory_space<vmem>>, vector<1x48xf32>
    %41 = vector.broadcast %40 : vector<1x48xf32> to vector<2x48xf32>
    %42 = arith.addf %39, %41 : vector<2x48xf32>
    %cst_26 = arith.constant 0.000000e+00 : f32
    %43 = vector.broadcast %cst_26 : f32 to vector<2x48xf32>
    %44 = arith.maximumf %42, %43 : vector<2x48xf32>
    %c0_27 = arith.constant 0 : index
    %c0_28 = arith.constant 0 : index
    %45 = vector.load %arg10[%c0_27, %c0_28] : memref<48x48xf32, #tpu.memory_space<vmem>>, vector<48x48xf32>
    %cst_29 = arith.constant dense<0.000000e+00> : vector<2x48xf32>
    %46 = tpu.matmul %44, %45, %cst_29 {dimension_numbers = #tpu.dot_dimension_numbers<[1], [0], [0], [1], [0, 0, 1, 1], [], []>} : vector<2x48xf32>, vector<48x48xf32>, vector<2x48xf32> -> vector<2x48xf32>
    %c0_30 = arith.constant 0 : index
    %c0_31 = arith.constant 0 : index
    %47 = vector.load %arg11[%c0_30, %c0_31] : memref<1x48xf32, #tpu.memory_space<vmem>>, vector<1x48xf32>
    %48 = vector.broadcast %47 : vector<1x48xf32> to vector<2x48xf32>
    %49 = arith.addf %46, %48 : vector<2x48xf32>
    %cst_32 = arith.constant 0.000000e+00 : f32
    %50 = vector.broadcast %cst_32 : f32 to vector<2x48xf32>
    %51 = arith.maximumf %49, %50 : vector<2x48xf32>
    %c0_33 = arith.constant 0 : index
    %c0_34 = arith.constant 0 : index
    %52 = vector.load %arg12[%c0_33, %c0_34] : memref<32x48xf32, #tpu.memory_space<vmem>>, vector<32x48xf32>
    %cst_35 = arith.constant dense<0.000000e+00> : vector<2x48xf32>
    %53 = tpu.matmul %37, %52, %cst_35 {dimension_numbers = #tpu.dot_dimension_numbers<[1], [0], [0], [1], [0, 0, 1, 1], [], []>} : vector<2x32xf32>, vector<32x48xf32>, vector<2x48xf32> -> vector<2x48xf32>
    %c0_36 = arith.constant 0 : index
    %c0_37 = arith.constant 0 : index
    %54 = vector.load %arg13[%c0_36, %c0_37] : memref<1x48xf32, #tpu.memory_space<vmem>>, vector<1x48xf32>
    %55 = vector.broadcast %54 : vector<1x48xf32> to vector<2x48xf32>
    %56 = arith.addf %53, %55 : vector<2x48xf32>
    %57 = arith.addf %51, %56 : vector<2x48xf32>
    %cst_38 = arith.constant 0.000000e+00 : f32
    %58 = vector.broadcast %cst_38 : f32 to vector<2x48xf32>
    %59 = arith.maximumf %57, %58 : vector<2x48xf32>
    %c0_39 = arith.constant 0 : index
    %c0_40 = arith.constant 0 : index
    %60 = vector.load %arg14[%c0_39, %c0_40] : memref<48x32xf32, #tpu.memory_space<vmem>>, vector<48x32xf32>
    %cst_41 = arith.constant dense<0.000000e+00> : vector<2x32xf32>
    %61 = tpu.matmul %59, %60, %cst_41 {dimension_numbers = #tpu.dot_dimension_numbers<[1], [0], [0], [1], [0, 0, 1, 1], [], []>} : vector<2x48xf32>, vector<48x32xf32>, vector<2x32xf32> -> vector<2x32xf32>
    %c0_42 = arith.constant 0 : index
    %c0_43 = arith.constant 0 : index
    %62 = vector.load %arg15[%c0_42, %c0_43] : memref<1x32xf32, #tpu.memory_space<vmem>>, vector<1x32xf32>
    %63 = vector.broadcast %62 : vector<1x32xf32> to vector<2x32xf32>
    %64 = arith.addf %61, %63 : vector<2x32xf32>
    %cst_44 = arith.constant 0.000000e+00 : f32
    %65 = vector.broadcast %cst_44 : f32 to vector<2x32xf32>
    %66 = arith.maximumf %64, %65 : vector<2x32xf32>
    %c0_45 = arith.constant 0 : index
    %c0_46 = arith.constant 0 : index
    %67 = vector.load %arg16[%c0_45, %c0_46] : memref<32x32xf32, #tpu.memory_space<vmem>>, vector<32x32xf32>
    %cst_47 = arith.constant dense<0.000000e+00> : vector<2x32xf32>
    %68 = tpu.matmul %66, %67, %cst_47 {dimension_numbers = #tpu.dot_dimension_numbers<[1], [0], [0], [1], [0, 0, 1, 1], [], []>} : vector<2x32xf32>, vector<32x32xf32>, vector<2x32xf32> -> vector<2x32xf32>
    %c0_48 = arith.constant 0 : index
    %c0_49 = arith.constant 0 : index
    %69 = vector.load %arg17[%c0_48, %c0_49] : memref<1x32xf32, #tpu.memory_space<vmem>>, vector<1x32xf32>
    %70 = vector.broadcast %69 : vector<1x32xf32> to vector<2x32xf32>
    %71 = arith.addf %68, %70 : vector<2x32xf32>
    %cst_50 = arith.constant 0.000000e+00 : f32
    %72 = vector.broadcast %cst_50 : f32 to vector<2x32xf32>
    %73 = arith.maximumf %71, %72 : vector<2x32xf32>
    %c0_51 = arith.constant 0 : index
    %c0_52 = arith.constant 0 : index
    %74 = vector.load %arg18[%c0_51, %c0_52] : memref<48x32xf32, #tpu.memory_space<vmem>>, vector<48x32xf32>
    %cst_53 = arith.constant dense<0.000000e+00> : vector<2x32xf32>
    %75 = tpu.matmul %59, %74, %cst_53 {dimension_numbers = #tpu.dot_dimension_numbers<[1], [0], [0], [1], [0, 0, 1, 1], [], []>} : vector<2x48xf32>, vector<48x32xf32>, vector<2x32xf32> -> vector<2x32xf32>
    %c0_54 = arith.constant 0 : index
    %c0_55 = arith.constant 0 : index
    %76 = vector.load %arg19[%c0_54, %c0_55] : memref<1x32xf32, #tpu.memory_space<vmem>>, vector<1x32xf32>
    %77 = vector.broadcast %76 : vector<1x32xf32> to vector<2x32xf32>
    %78 = arith.addf %75, %77 : vector<2x32xf32>
    %79 = arith.addf %73, %78 : vector<2x32xf32>
    %cst_56 = arith.constant 0.000000e+00 : f32
    %80 = vector.broadcast %cst_56 : f32 to vector<2x32xf32>
    %81 = arith.maximumf %79, %80 : vector<2x32xf32>
    %c0_57 = arith.constant 0 : index
    %c0_58 = arith.constant 0 : index
    %82 = vector.load %arg20[%c0_57, %c0_58] : memref<32x8xf32, #tpu.memory_space<vmem>>, vector<32x8xf32>
    %cst_59 = arith.constant dense<0.000000e+00> : vector<2x8xf32>
    %83 = tpu.matmul %81, %82, %cst_59 {dimension_numbers = #tpu.dot_dimension_numbers<[1], [0], [0], [1], [0, 0, 1, 1], [], []>} : vector<2x32xf32>, vector<32x8xf32>, vector<2x8xf32> -> vector<2x8xf32>
    %c0_60 = arith.constant 0 : index
    %c0_61 = arith.constant 0 : index
    %84 = vector.load %arg21[%c0_60, %c0_61] : memref<1x8xf32, #tpu.memory_space<vmem>>, vector<1x8xf32>
    %85 = vector.broadcast %84 : vector<1x8xf32> to vector<2x8xf32>
    %86 = arith.addf %83, %85 : vector<2x8xf32>
    %c0_62 = arith.constant 0 : index
    %c0_63 = arith.constant 0 : index
    %87 = vector.load %arg22[%c0_62, %c0_63] : memref<2x8xf32, #tpu.memory_space<vmem>>, vector<2x8xf32>
    tpu.vector_store %arg22[%c0_62, %c0_63], %86 {strides = array<i32>} : memref<2x8xf32, #tpu.memory_space<vmem>>, vector<2x8xf32>,
    return
  }
  func.func @transform_0(%arg0: i32, %arg1: memref<2xi32, #tpu.memory_space<smem>>) -> (i32, i32) {
    %c0_i32 = arith.constant 0 : i32
    %c0_i32_0 = arith.constant 0 : i32
    %c0_i32_1 = arith.constant 0 : i32
    return %c0_i32, %c0_i32_0 : i32, i32
  }
  func.func @transform_1(%arg0: i32, %arg1: memref<2xi32, #tpu.memory_space<smem>>) -> (i32, i32) {
    %c0_i32 = arith.constant 0 : i32
    %c0_i32_0 = arith.constant 0 : i32
    %c0_i32_1 = arith.constant 0 : i32
    return %c0_i32, %c0_i32_0 : i32, i32
  }
  func.func @transform_2(%arg0: i32, %arg1: memref<2xi32, #tpu.memory_space<smem>>) -> (i32, i32) {
    %c0_i32 = arith.constant 0 : i32
    %c0_i32_0 = arith.constant 0 : i32
    %c0_i32_1 = arith.constant 0 : i32
    return %c0_i32, %c0_i32_0 : i32, i32
  }
  func.func @transform_3(%arg0: i32, %arg1: memref<2xi32, #tpu.memory_space<smem>>) -> (i32, i32) {
    %c0_i32 = arith.constant 0 : i32
    %c0_i32_0 = arith.constant 0 : i32
    %c0_i32_1 = arith.constant 0 : i32
    return %c0_i32, %c0_i32_0 : i32, i32
  }
  func.func @transform_4(%arg0: i32, %arg1: memref<2xi32, #tpu.memory_space<smem>>) -> (i32, i32) {
    %c0_i32 = arith.constant 0 : i32
    %c0_i32_0 = arith.constant 0 : i32
    %c0_i32_1 = arith.constant 0 : i32
    return %c0_i32, %c0_i32_0 : i32, i32
  }
  func.func @transform_5(%arg0: i32, %arg1: memref<2xi32, #tpu.memory_space<smem>>) -> (i32, i32) {
    %c0_i32 = arith.constant 0 : i32
    %c0_i32_0 = arith.constant 0 : i32
    %c0_i32_1 = arith.constant 0 : i32
    return %c0_i32, %c0_i32_0 : i32, i32
  }
  func.func @transform_6(%arg0: i32, %arg1: memref<2xi32, #tpu.memory_space<smem>>) -> (i32, i32) {
    %c0_i32 = arith.constant 0 : i32
    %c0_i32_0 = arith.constant 0 : i32
    %c0_i32_1 = arith.constant 0 : i32
    return %c0_i32, %c0_i32_0 : i32, i32
  }
  func.func @transform_7(%arg0: i32, %arg1: memref<2xi32, #tpu.memory_space<smem>>) -> (i32, i32) {
    %c0_i32 = arith.constant 0 : i32
    %c0_i32_0 = arith.constant 0 : i32
    %c0_i32_1 = arith.constant 0 : i32
    return %c0_i32, %c0_i32_0 : i32, i32
  }
  func.func @transform_8(%arg0: i32, %arg1: memref<2xi32, #tpu.memory_space<smem>>) -> (i32, i32) {
    %c0_i32 = arith.constant 0 : i32
    %c0_i32_0 = arith.constant 0 : i32
    %c0_i32_1 = arith.constant 0 : i32
    return %c0_i32, %c0_i32_0 : i32, i32
  }
  func.func @transform_9(%arg0: i32, %arg1: memref<2xi32, #tpu.memory_space<smem>>) -> (i32, i32) {
    %c0_i32 = arith.constant 0 : i32
    %c0_i32_0 = arith.constant 0 : i32
    %c0_i32_1 = arith.constant 0 : i32
    return %c0_i32, %c0_i32_0 : i32, i32
  }
  func.func @transform_10(%arg0: i32, %arg1: memref<2xi32, #tpu.memory_space<smem>>) -> (i32, i32) {
    %c0_i32 = arith.constant 0 : i32
    %c0_i32_0 = arith.constant 0 : i32
    %c0_i32_1 = arith.constant 0 : i32
    return %c0_i32, %c0_i32_0 : i32, i32
  }
  func.func @transform_11(%arg0: i32, %arg1: memref<2xi32, #tpu.memory_space<smem>>) -> (i32, i32) {
    %c0_i32 = arith.constant 0 : i32
    %c0_i32_0 = arith.constant 0 : i32
    %c0_i32_1 = arith.constant 0 : i32
    return %c0_i32, %c0_i32_0 : i32, i32
  }
  func.func @transform_12(%arg0: i32, %arg1: memref<2xi32, #tpu.memory_space<smem>>) -> (i32, i32) {
    %c0_i32 = arith.constant 0 : i32
    %c0_i32_0 = arith.constant 0 : i32
    %c0_i32_1 = arith.constant 0 : i32
    return %c0_i32, %c0_i32_0 : i32, i32
  }
  func.func @transform_13(%arg0: i32, %arg1: memref<2xi32, #tpu.memory_space<smem>>) -> (i32, i32) {
    %c0_i32 = arith.constant 0 : i32
    %c0_i32_0 = arith.constant 0 : i32
    %c0_i32_1 = arith.constant 0 : i32
    return %c0_i32, %c0_i32_0 : i32, i32
  }
  func.func @transform_14(%arg0: i32, %arg1: memref<2xi32, #tpu.memory_space<smem>>) -> (i32, i32) {
    %c0_i32 = arith.constant 0 : i32
    %c0_i32_0 = arith.constant 0 : i32
    %c0_i32_1 = arith.constant 0 : i32
    return %c0_i32, %c0_i32_0 : i32, i32
  }
  func.func @transform_15(%arg0: i32, %arg1: memref<2xi32, #tpu.memory_space<smem>>) -> (i32, i32) {
    %c0_i32 = arith.constant 0 : i32
    %c0_i32_0 = arith.constant 0 : i32
    %c0_i32_1 = arith.constant 0 : i32
    return %c0_i32, %c0_i32_0 : i32, i32
  }
  func.func @transform_16(%arg0: i32, %arg1: memref<2xi32, #tpu.memory_space<smem>>) -> (i32, i32) {
    %c0_i32 = arith.constant 0 : i32
    %c0_i32_0 = arith.constant 0 : i32
    %c0_i32_1 = arith.constant 0 : i32
    return %c0_i32, %c0_i32_0 : i32, i32
  }
  func.func @transform_17(%arg0: i32, %arg1: memref<2xi32, #tpu.memory_space<smem>>) -> (i32, i32) {
    %c0_i32 = arith.constant 0 : i32
    %c0_i32_0 = arith.constant 0 : i32
    %c0_i32_1 = arith.constant 0 : i32
    return %c0_i32, %c0_i32_0 : i32, i32
  }
  func.func @transform_18(%arg0: i32, %arg1: memref<2xi32, #tpu.memory_space<smem>>) -> (i32, i32) {
    %c0_i32 = arith.constant 0 : i32
    %c0_i32_0 = arith.constant 0 : i32
    %c0_i32_1 = arith.constant 0 : i32
    return %c0_i32, %c0_i32_0 : i32, i32
  }
  func.func @transform_19(%arg0: i32, %arg1: memref<2xi32, #tpu.memory_space<smem>>) -> (i32, i32) {
    %c0_i32 = arith.constant 0 : i32
    %c0_i32_0 = arith.constant 0 : i32
    %c0_i32_1 = arith.constant 0 : i32
    return %c0_i32, %c0_i32_0 : i32, i32
  }
  func.func @transform_20(%arg0: i32, %arg1: memref<2xi32, #tpu.memory_space<smem>>) -> (i32, i32) {
    %c0_i32 = arith.constant 0 : i32
    %c0_i32_0 = arith.constant 0 : i32
    %c0_i32_1 = arith.constant 0 : i32
    return %c0_i32, %c0_i32_0 : i32, i32
  }
}

</mosaic_0001>

<bundles_post_ra>
// kernel: tpu_custom_call.1
= control target key start
LH: loop header
LB: loop body
LE: loop exit
PB: predicated region body
PF: predicated region fallthrough
CT: control target
= control target key end

     0   :  { %s2044_s0 = inlined_call_operand.vmem [shape: s32[2], index: 0, kind: input, shape index: {}]   ;;  %s2045_s1 = inlined_call_operand.hbm [shape: f32[16,16], index: 1, kind: input, shape index: {}]   ;;  %s2046_s2 = inlined_call_operand.vmem [shape: f32[16,4], index: 2, kind: input, shape index: {}]   ;;  %s2047_s3 = inlined_call_operand.hbm [shape: f32[4,32], index: 3, kind: input, shape index: {}]   ;;  %s2048_s4 = inlined_call_operand.hbm [shape: f32[1,32], index: 4, kind: input, shape index: {}]   ;;  %s2049_s5 = inlined_call_operand.vmem [shape: f32[32,32], index: 5, kind: input, shape index: {}]   ;;  %s2050_s6 = inlined_call_operand.hbm [shape: f32[1,32], index: 6, kind: input, shape index: {}]   ;;  %s2051_s7 = inlined_call_operand.vmem [shape: f32[32,48], index: 7, kind: input, shape index: {}]   ;;  %s2052_s8 = inlined_call_operand.hbm [shape: f32[1,48], index: 8, kind: input, shape index: {}]   ;;  %s2053_s9 = inlined_call_operand.vmem [shape: f32[48,48], index: 9, kind: input, shape index: {}]   ;;  %s2054_s10 = inlined_call_operand.hbm [shape: f32[1,48], index: 10, kind: input, shape index: {}]   ;;  %s2055_s11 = inlined_call_operand.vmem [shape: f32[32,48], index: 11, kind: input, shape index: {}]   ;;  %s2056_s12 = inlined_call_operand.hbm [shape: f32[1,48], index: 12, kind: input, shape index: {}]   ;;  %s2057_s13 = inlined_call_operand.vmem [shape: f32[48,32], index: 13, kind: input, shape index: {}]   ;;  %s2058_s14 = inlined_call_operand.hbm [shape: f32[1,32], index: 14, kind: input, shape index: {}]   ;;  %s2059_s15 = inlined_call_operand.vmem [shape: f32[32,32], index: 15, kind: input, shape index: {}]   ;;  %s2060_s16 = inlined_call_operand.hbm [shape: f32[1,32], index: 16, kind: input, shape index: {}]   ;;  %s2061_s17 = inlined_call_operand.vmem [shape: f32[48,32], index: 17, kind: input, shape index: {}]   ;;  %s2062_s18 = inlined_call_operand.vmem [shape: f32[1,32], index: 18, kind: input, shape index: {}]   ;;  %s2063_s19 = inlined_call_operand.vmem [shape: f32[32,8], index: 19, kind: input, shape index: {}]   ;;  %s2064_s20 = inlined_call_operand.vmem [shape: f32[1,8], index: 20, kind: input, shape index: {}]   ;;  %s2065_s21 = inlined_call_operand.hbm [shape: f32[2,8], index: 21, kind: output, shape index: {}]  }
   0x1   :  { %2069 = sst [smem:[#allocation27_spill]] %s2044_s0 }
   0x2   :  { %2070 = sst [smem:[#allocation28_spill]] %s2045_s1 }
   0x3   :  { %2071 = sst [smem:[#allocation29_spill]] %s2046_s2 }
   0x4   :  { %2072 = sst [smem:[#allocation30_spill]] %s2047_s3 }
   0x5   :  { %2073 = sst [smem:[#allocation31_spill]] %s2048_s4 }
   0x6   :  { %2074 = sst [smem:[#allocation32_spill]] %s2049_s5 }
   0x7   :  { %2075 = sst [smem:[#allocation33_spill]] %s2059_s15 }
   0x8   :  { %s2076_s26 = sld [smem:[#allocation27_spill]] }
   0xe   :  { %s26_s15 = sshll.u32 %s2076_s26, 4  ;;  %s27_s15 = int_to_ptr.vmem [resolvable:$true] %s26_s15 }
   0xf   :  { %s1467_s27 = scalar_lea.vmem %s27_s15, 16  ;;  %p1472_p1 = scmp.lt.s32.totalorder %s27_s15, %s27_s15 }
  0x10   :  { %p1468_p0 = scmp.ne.s32.totalorder %s27_s15, %s1467_s27  ;;  %p1473_p2 = scmp.lt.s32.totalorder %s1467_s27, %s1467_s27 }
  0x12   :  { %p1474_p3 = por %p1473_p2, %p1472_p1 }
  0x14   :  { %p1475_p4 = pnand %p1474_p3, %p1468_p0 }
  0x16   :  { %1478 = shalt.err (!%p1475_p4)  }
  0x17   :  { %s1693_s3 = smov [#allocation3]  }
  0x18   :  { %29 = dma.vmem_to_smem %s27_s15, 16, %s1693_s3, [#allocation2] }
  0x19   :  { %1679 = dma.done.wait [#allocation2], 16 }
  0x1a   :  { %1680 = vsyncadd [#allocation2], 4294967280 }
  0x1b   :  { %31 = sfence }
  0x1c   :  { %32 = vsyncpa [#allocation5], 0 }
  0x1d   :  { %33 = vsyncpa [#allocation8], 0 }
  0x1e   :  { %34 = vsyncpa [#allocation11], 0 }
  0x1f   :  { %35 = vsyncpa [#allocation14], 0 }
  0x20   :  { %36 = vsyncpa [#allocation17], 0 }
  0x21   :  { %37 = vsyncpa [#allocation6], 0  ;;  %s1694_s28 = smov [#allocation7]   ;;  %s1695_s0 = smov [#allocation10]  }
  0x22   :  { %s58_s29 = sshll.u32 %s1694_s28, 4  ;;  %s80_s4 = sshll.u32 %s1695_s0, 4  ;;  %s59_s29 = int_to_ptr.vmem [resolvable:$true] %s58_s29  ;;  %s81_s4 = int_to_ptr.vmem [resolvable:$true] %s80_s4 }
  0x23   :  { %s1487_s30 = scalar_lea.vmem %s59_s29, 64  ;;  %p1492_p6 = scmp.lt.s32.totalorder %s59_s29, %s59_s29 }
  0x24   :  { %p1488_p5 = scmp.ne.s32.totalorder %s59_s29, %s1487_s30  ;;  %p1493_p7 = scmp.lt.s32.totalorder %s1487_s30, %s1487_s30 }
  0x26   :  { %p1494_p8 = por %p1493_p7, %p1492_p6 }
  0x28   :  { %p1495_p9 = pnand %p1494_p8, %p1488_p5 }
  0x2a   :  { %1498 = shalt.err (!%p1495_p9)
}
  0x2b   :  { %s2077_s22 = sld [smem:[#allocation30_spill]]  ;;  %s1507_s23 = scalar_lea.vmem %s81_s4, 16 }
  0x2c   :  { %p1508_p10 = scmp.ne.s32.totalorder %s81_s4, %s1507_s23  ;;  %s1511_s1 = scalar_lea.vmem %s81_s4, 32 }
  0x2d   :  { %p1512_p11 = scmp.lt.s32.totalorder %s81_s4, %s81_s4  ;;  %p1513_p12 = scmp.lt.s32.totalorder %s1511_s1, %s1507_s23 }
  0x2f   :  { %p1514_p13 = por %p1513_p12, %p1512_p11 }
  0x31   :  { %61 = dma.hbm_to_vmem [thread:$0]  %s2077_s22, 64, %s59_s29, [#allocation8]  }
  0x32   :  { %p1515_p0 = pnand %p1514_p13, %p1508_p10 }
  0x34   :  { %1518 = shalt.err (!%p1515_p0)
}
  0x35   :  { %83 = dma.hbm_to_vmem [thread:$0]  %s2050_s6, 16, %s81_s4, [#allocation11]  }
  0x36   :  { %s1696_s25 = smov [#allocation13]   ;;  %s1697_s27 = smov [#allocation16]  }
  0x37   :  { %s104_s26 = sshll.u32 %s1696_s25, 4  ;;  %s128_s3 = sshll.u32 %s1697_s27, 4  ;;  %s105_s26 = int_to_ptr.vmem [resolvable:$true] %s104_s26  ;;  %s129_s3 = int_to_ptr.vmem [resolvable:$true] %s128_s3 }
  0x38   :  { %s1527_s28 = scalar_lea.vmem %s105_s26, 16  ;;  %s1531_s29 = scalar_lea.vmem %s105_s26, 32 }
  0x39   :  { %p1528_p1 = scmp.ne.s32.totalorder %s105_s26, %s1527_s28  ;;  %p1532_p2 = scmp.lt.s32.totalorder %s105_s26, %s105_s26 }
  0x3a   :  { %p1533_p3 = scmp.lt.s32.totalorder %s1531_s29, %s1527_s28 }
  0x3c   :  { %p1534_p4 = por %p1533_p3, %p1532_p2 }
  0x3e   :  { %p1535_p5 = pnand %p1534_p4, %p1528_p1 }
  0x40   :  { %1538 = shalt.err (!%p1535_p5)
}
  0x41   :  { %107 = dma.hbm_to_vmem [thread:$0]  %s2054_s10, 16, %s105_s26, [#allocation14]  }
  0x42   :  { %s1547_s15 = scalar_lea.vmem %s129_s3, 16  ;;  %s1551_s6 = scalar_lea.vmem %s129_s3, 32 }
  0x43   :  { %p1548_p6 = scmp.ne.s32.totalorder %s129_s3, %s1547_s15  ;;  %p1552_p7 = scmp.lt.s32.totalorder %s129_s3, %s129_s3 }
  0x44   :  { %p1553_p8 = scmp.lt.s32.totalorder %s1551_s6, %s1547_s15 }
  0x46   :  { %p1554_p9 = por %p1553_p8, %p1552_p7 }
  0x48   :  { %p1555_p10 = pnand %p1554_p9, %p1548_p6 }
  0x4a   :  { %1558 = shalt.err (!%p1555_p10)
}
  0x4b   :  { %131 = dma.hbm_to_vmem [thread:$0]  %s2058_s14, 16, %s129_s3, [#allocation17]  }
  0x4c   :  { %s1698_s22 = smov [#allocation4]  }
  0x4d   :  { %s43_s23 = sshll.u32 %s1698_s22, 4  ;;  %s44_s23 = int_to_ptr.vmem [resolvable:$true] %s43_s23 }
  0x4e   :  { %s1567_s1 = scalar_lea.vmem %s44_s23, 256  ;;  %p1572_p12 = scmp.lt.s32.totalorder %s44_s23, %s44_s23 }
  0x4f   :  { %p1568_p11 = scmp.ne.s32.totalorder %s44_s23, %s1567_s1  ;;  %p1573_p13 = scmp.lt.s32.totalorder %s1567_s1, %s1567_s1 }
  0x51   :  { %p1574_p0 = por %p1573_p13, %p1572_p12 }
  0x53   :  { %p1575_p1 = pnand %p1574_p0, %p1568_p11 }
  0x55   :  { %1578 = shalt.err (!%p1575_p1)
}
  0x56   :  { %s1699_s10 = smov 128   ;;  %s1700_s24 = smov 8  }
  0x57   :  { %s2078_s26 = sld [smem:[#allocation28_spill]]  ;;  %s1701_s27 = smov [#allocation9]  }
  0x58   :  { %s68_s28 = sshll.u32 %s1701_s27, 4  ;;  %s1702_s14 = smov [#allocation12]   ;;  %s69_s28 = int_to_ptr.vmem [resolvable:$true] %s68_s28 }
  0x59   :  { %s92_s3 = sshll.u32 %s1702_s14, 4  ;;  %s1587_s29 = scalar_lea.vmem %s69_s28, 16  ;;  %s93_s3 = int_to_ptr.vmem [resolvable:$true] %s92_s3 }
  0x5a   :  { %p1588_p2 = scmp.ne.s32.totalorder %s69_s28, %s1587_s29  ;;  %s1591_s0 = scalar_lea.vmem %s69_s28, 32 }
  0x5b   :  { %p1592_p3 = scmp.lt.s32.totalorder %s69_s28, %s69_s28  ;;  %p1593_p4 = scmp.lt.s32.totalorder %s1591_s0, %s1587_s29 }
  0x5d   :  { %49 = dma.hbm_to_vmem [thread:$0]  %s2078_s26, 256, %s44_s23, [#allocation5], %s1699_s10, %s1699_s10, %s1700_s24  }
  0x5e   :  { %p1594_p5 = por %p1593_p4, %p1592_p3 }
  0x60   :  { %p1595_p6 = pnand %p1594_p5, %p1588_p2 }
  0x62   :  { %1598 = shalt.err (!%p1595_p6)
}
  0x63   :  { %s2079_s6 = sld [smem:[#allocation31_spill]]  ;;  %s1607_s4 = scalar_lea.vmem %s93_s3, 16 }
  0x64   :  { %p1608_p7 = scmp.ne.s32.totalorder %s93_s3, %s1607_s4  ;;  %s1611_s5 = scalar_lea.vmem %s93_s3, 32 }
  0x65   :  { %p1612_p8 = scmp.lt.s32.totalorder %s93_s3, %s93_s3  ;;  %p1613_p9 = scmp.lt.s32.totalorder %s1611_s5, %s1607_s4 }
  0x67   :  { %p1614_p10 = por %p1613_p9, %p1612_p8 }
  0x69   :  { %71 = dma.hbm_to_vmem [thread:$0]  %s2079_s6, 16, %s69_s28, [#allocation8]  }
  0x6a   :  { %p1615_p11 = pnand %p1614_p10, %p1608_p7 }
  0x6c   :  { %1618 = shalt.err (!%p1615_p11)
}
  0x6d   :  { %95 = dma.hbm_to_vmem [thread:$0]  %s2052_s8, 16, %s93_s3, [#allocation11]  }
  0x6e   :  { %s1703_s1 = smov [#allocation15]   ;;  %s1704_s24 = smov [#allocation18]  }
  0x6f   :  { %s116_s10 = sshll.u32 %s1703_s1, 4  ;;  %s140_s2 = sshll.u32 %s1704_s24, 4  ;;  %s117_s10 = int_to_ptr.vmem [resolvable:$true] %s116_s10  ;;  %s141_s2 = int_to_ptr.vmem [resolvable:$true] %s140_s2 }
  0x70   :  { %s1627_s25 = scalar_lea.vmem %s117_s10, 16  ;;  %s1631_s26 = scalar_lea.vmem %s117_s10, 32 }
  0x71   :  { %p1628_p12 = scmp.ne.s32.totalorder %s117_s10, %s1627_s25  ;;  %p1632_p13 = scmp.lt.s32.totalorder %s117_s10, %s117_s10 }
  0x72   :  { %p1633_p0 = scmp.lt.s32.totalorder %s1631_s26, %s1627_s25 }
  0x74   :  { %p1634_p1 = por %p1633_p0, %p1632_p13 }
  0x76   :  { %p1635_p2 = pnand %p1634_p1, %p1628_p12 }
  0x78   :  { %1638 = shalt.err (!%p1635_p2)
}
  0x79   :  { %119 = dma.hbm_to_vmem [thread:$0]  %s2056_s12, 16, %s117_s10, [#allocation14]  }
  0x7a   :  { %s1647_s14 = scalar_lea.vmem %s141_s2, 16  ;;  %s1651_s8 = scalar_lea.vmem %s141_s2, 32 }
  0x7b   :  { %p1648_p3 = scmp.ne.s32.totalorder %s141_s2, %s1647_s14  ;;  %p1652_p4 = scmp.lt.s32.totalorder %s141_s2, %s141_s2 }
  0x7c   :  { %p1653_p5 = scmp.lt.s32.totalorder %s1651_s8, %s1647_s14 }
  0x7e   :  { %p1654_p6 = por %p1653_p5, %p1652_p4 }
  0x80   :  { %p1655_p7 = pnand %p1654_p6, %p1648_p3 }
  0x82   :  { %1658 = shalt.err (!%p1655_p7)
}
  0x83   :  { %143 = dma.hbm_to_vmem [thread:$0]  %s2060_s16, 16, %s141_s2, [#allocation17]  }
  0x84   :  { %1681 = dma.done.wait [#allocation5], 256  }
  0x85   :  { %1682 = vsyncadd [#allocation5], 4294967040 }
  0x86   :  { %1683 = dma.done.wait [#allocation8], 80  }
  0x87   :  { %1684 = vsyncadd [#allocation8], 4294967216 }
  0x88   :  { %1685 = dma.done.wait [#allocation11], 32  }
  0x89   :  { %1686 = vsyncadd [#allocation11], 4294967264 }
  0x8a   :  { %1687 = dma.done.wait [#allocation14], 32  }
  0x8b   :  { %1688 = vsyncadd [#allocation14], 4294967264 }
  0x8c   :  { %1689 = dma.done.wait [#allocation17], 32  }
  0x8d   :  { %1690 = vsyncadd [#allocation17], 4294967264  ;;  %vm191_vm0 = vcmask 1043456   ;;  %vm184_vm1 = vcmask 31744   ;;  %v183_v0 = vld [vmem:[#allocation7] sm:$0xf]  ;;  %v531_v25 = vlaneseq }
  0x8e   :  { %s2080_s30 = sld [smem:[#allocation29_spill]]  ;;  %1326 = vmatprep.subr.msk.mxu0 %vm191_vm0, %v183_v0  ;;  %v179_v3 = vld [vmem:[#allocation4] sm:$0xff]  ;;  %vm277_vm2 = vcmask 130048   ;;  %v180_v6 = vld [vmem:[#allocation4 + $0x8] sm:$0xff]  ;;  %v1241_v11 = vld [vmem:[#allocation9] ss:$0 sm:$0xff] }
  0x8f   :  { %1327 = vmatpush3.msk.msra.mxu0 %vm191_vm0, %v183_v0  ;;  %1335 = vmatprep.mubr.msk.f32.mxu1 %vm277_vm2, %v179_v3  ;;  %s2081_s5 = sld [smem:[#allocation32_spill]]  ;;  %vm365_vm3 = vcmask 261120   ;;  %v1705_v20 = vmov 0.0   ;;  %vm1706_vm4 = vmmov 0   ;;  %v623_v21 = vld [vmem:[%s2051_s7 + $0x18] sm:$0xff]  ;;  %v622_v22 = vld [vmem:[%s2051_s7 + $0x10] sm:$0xff] }
  0x90   :  { %v621_v23 = vld [vmem:[%s2051_s7 + $0x8] sm:$0xff]  ;;  %v620_v24 = vld [vmem:[%s2051_s7] sm:$0xff]  ;;  %s536_s12 = sld [smem:[#allocation3]]  ;;  %v532_v26 = vshrl.u32 %v531_v25, 7  ;;  %v534_v27 = vand.u32 127, %v531_v25  ;;  %v708_v41 = vld [vmem:[%s2053_s9 + $0x18] sm:$0xff] }
  0x91   :  { %s1249_s0 = sld [smem:[#allocation3 + $0x1]]  ;;  %v1246_v30 = vld [vmem:[#allocation10] ss:$0 sm:$0xff]  ;;  %v710_v39 = vld [vmem:[%s2053_s9 + $0x28] sm:$0xff]  ;;  %v709_v40 = vld [vmem:[%s2053_s9 + $0x20] sm:$0xff]  ;;  %vm718_vm11 = vcmask 392192  }
  0x92   :  { %vm535_vm5 = vcmp.eq.s32.totalorder %v532_v26, 0  ;;  %vm541_vm8 = vcmp.eq.s32.totalorder %v532_v26, 1  ;;  %v796_v42 = vld [vmem:[%s2055_s11 + $0x18] sm:$0xff]  ;;  %v795_v44 = vld [vmem:[%s2055_s11 + $0x10] sm:$0xff]  ;;  %v794_v46 = vld [vmem:[%s2055_s11 + $0x8] sm:$0xff]  ;;  %s2082_s1 = sld [smem:[#allocation33_spill]] }
  0x93   :  { %v793_v47 = vld [vmem:[%s2055_s11] sm:$0xff]  ;;  %v707_v48 = vld [vmem:[%s2053_s9 + $0x10] sm:$0xff]  ;;  %v706_v49 = vld [vmem:[%s2053_s9 + $0x8] sm:$0xff]  ;;  %vm1217_vm12 = vcmask 58368  }
  0x94   :  { %v181_v1 = vld [vmem:[%s2080_s30] sm:$0xff]  ;;  %v182_v2 = vld [vmem:[%s2080_s30 + $0x8] sm:$0xff]  ;;  %v1251_v51 = vld [vmem:[#allocation12] ss:$0 sm:$0xff] }
  0x95   :  { %1328 = vmatprep.mubr.msk.f32.mxu0 %vm184_vm1, %v181_v1  ;;  %v364_v7 = vld [vmem:[%s2081_s5 + $0x18] sm:$0xff]  ;;  %v363_v8 = vld [vmem:[%s2081_s5 + $0x10] sm:$0xff]  ;;  %v362_v9 = vld [vmem:[%s2081_s5 + $0x8] sm:$0xff] }
  0x96   :  { %1329 = vmatmul.mubr.msk.f32.vlgmr.msra.gmra.mxu0 %vm184_vm1, %v182_v2  ;;  %1338 = vmatprep.subr.mxu0 %v364_v7  ;;  %v361_v10 = vld [vmem:[%s2081_s5] sm:$0xff]  ;;  %v537_v28 = vstv %s536_s12  ;;  %v881_v56 = vld [vmem:[%s2057_s13 + $0x28] sm:$0xff]  ;;  %v879_v60 = vld [vmem:[%s2057_s13 + $0x18] sm:$0xff] }
  0x97   :  { %1339 = vmatpush3.msra.mxu0 %v364_v7  ;;  %vm538_vm6 = vcmp.eq.s32.totalorder %v534_v27, %v537_v28  ;;  %v543_v29 = vstv %s1249_s0  ;;  %v705_v50 = vld [vmem:[%s2053_s9] sm:$0xff]  ;;  %v878_v61 = vld [vmem:[%s2057_s13 + $0x10] sm:$0xff]  ;;  %v877_v62 = vld [vmem:[%s2057_s13 + $0x8] sm:$0xff] }
  0x98   :  { %1340 = vmatprep.subr.mxu0 %v363_v8  ;;  %vm539_vm7 = vmand %vm535_vm5, %vm538_vm6  ;;  %vm544_vm9 = vcmp.eq.s32.totalorder %v534_v27, %v543_v29  ;;  %v880_v59 = vld [vmem:[%s2057_s13 + $0x20] sm:$0xff]  ;;  %v966_v0 = vld [vmem:[%s2082_s1 + $0x18] sm:$0xff] }
  0x99   :  { %1341 = vmatpush3.msra.mxu0 %v363_v8  ;;  %v540_v34 = vsel %vm539_vm7, 1.0, %v1705_v20  ;;  %vm545_vm10 = vmand %vm541_vm8, %vm544_vm9  ;;  %v876_v63 = vld [vmem:[%s2057_s13] sm:$0xff]  ;;  %v965_v1 = vld [vmem:[%s2082_s1 + $0x10] sm:$0xff] }
  0x9a   :  { %1342 = vmatprep.subr.mxu0 %v362_v9  ;;  %v546_v38 = vsel %vm545_vm10, 1.0, %v540_v34  ;;  %v1253_v2 = vld [vmem:[#allocation13] ss:$0 sm:$0xff]  ;;  %v1135_v26 = vld [vmem:[%s2063_s19 + $0x10] sm:$0xff]  ;;  %v1134_v27 = vld [vmem:[%s2063_s19 + $0x8] sm:$0xff] }
  0x9b   :  { %1343 = vmatpush3.msra.mxu0 %v362_v9  ;;  %v1136_v25 = vld [vmem:[%s2063_s19 + $0x18] sm:$0xff]  ;;  %v1133_v28 = vld [vmem:[%s2063_s19] sm:$0xff]  ;;  %s1707_s19 = smov [#allocation19]  }
  0x9c   :  { %1344 = vmatprep.subr.mxu0 %v361_v10  ;;  %s1225_s2 = sshll.u32 %s1707_s19, 4  ;;  %s1226_s2 = int_to_ptr.vmem [resolvable:$true] %s1225_s2 }
  0x9d   :  { %1345 = vmatpush3.msra.mxu0 %v361_v10  ;;  %p1664_p9 = scmp.lt.s32.totalorder %s1226_s2, %s1226_s2 }
  0x9e   :  { %1363 = vmatprep.subr.mxu0 %v1705_v20 }
 0x156   :  { %v1330_v4 = vpop.f32.mrf.mxu0 }
 0x157   :  { %1331 = vmatprep.subr.mxu1 %v1330_v4 }
 0x158   :  { %v261_v5 = vpop.f32.mrf.mxu0  ;;  %1332 = vmatpush3.msra.mxu1 %v1330_v4 }
 0x159   :  { %1333 = vmatprep.subr.mxu1 %v261_v5 }
 0x15a   :  { %1334 = vmatpush3.msra.mxu1 %v261_v5 }
 0x15b   :  { %1336 = vmatmul.mubr.msk.f32.vlgmr.msra.gmra.mxu1 %vm277_vm2, %v180_v6 }
 0x15c   :  { %1353 = vmatprep.mubr.msk.f32.mxu1 %vm277_vm2, %v179_v3  ;;  %v1255_v3 = vld [vmem:[#allocation15] ss:$0 sm:$0xff] }
 0x21b   :  { %v1337_v12 = vpop.f32.mrf.mxu1 }
 0x21c   :  { %v356_v13 = vadd.f32 %v1337_v12, %v1241_v11  ;;  %v963_v12 = vld [vmem:[%s2082_s1] sm:$0xff] }
 0x21d   :  { %v350_v14 = vpop.f32.mrf.mxu1 }
 0x21e   :  { %v351_v15 = vadd.f32 %v1241_v11, %v350_v14  ;;  %v360_v17 = vmax.f32 %v356_v13, 0.0  ;;  %v964_v11 = vld [vmem:[%s2082_s1 + $0x8] sm:$0xff]  ;;  %v1257_v13 = vld [vmem:[#allocation16] ss:$0 sm:$0xff] }
 0x220   :  { %v359_v16 = vmax.f32 %v351_v15, 0.0 }
 0x222   :  { %1346 = vmatprep.mubr.msk.f32.mxu0 %vm365_vm3, %v359_v16 }
 0x223   :  { %1347 = vmatmul.mubr.msk.f32.vlgmr.msra.gmra.mxu0 %vm365_vm3, %v360_v17 }
 0x224   :  { %1371 = vmatprep.mubr.msk.f32.mxu0 %vm1706_vm4, %v1705_v20  ;;  %1364 = vmatpush3.msra.mxu0 %v623_v21  ;;  %v1051_v21 = vld [vmem:[%s2061_s17 + $0x18] sm:$0xff] }
 0x225   :  { %1365 = vmatprep.subr.mxu0 %v1705_v20 }
 0x226   :  { %1366 = vmatpush3.msra.mxu0 %v622_v22  ;;  %v1050_v22 = vld [vmem:[%s2061_s17 + $0x10] sm:$0xff] }
 0x227   :  { %1367 = vmatprep.subr.mxu0 %v1705_v20 }
 0x228   :  { %1368 = vmatpush3.msra.mxu0 %v621_v23  ;;  %v1049_v23 = vld [vmem:[%s2061_s17 + $0x8] sm:$0xff] }
 0x229   :  { %1369 = vmatprep.subr.mxu0 %v1705_v20 }
 0x22a   :  { %1370 = vmatpush3.msra.mxu0 %v620_v24  ;;  %v1048_v24 = vld [vmem:[%s2061_s17] sm:$0xff] }
 0x22b   :  { %1389 = vmatprep.subr.mxu0 %v1705_v20 }
 0x2e3   :  { %v1348_v18 = vpop.f32.mrf.mxu0 }
 0x2e4   :  { %1349 = vmatprep.subr.mxu1 %v1348_v18 }
 0x2e5   :  { %v438_v19 = vpop.f32.mrf.mxu0  ;;  %1350 = vmatpush3.msra.mxu1 %v1348_v18  ;;  %v1053_v18 = vld [vmem:[%s2061_s17 + $0x28] sm:$0xff] }
 0x2e6   :  { %1351 = vmatprep.subr.mxu1 %v438_v19 }
 0x2e7   :  { %1352 = vmatpush3.msra.mxu1 %v438_v19  ;;  %v1052_v19 = vld [vmem:[%s2061_s17 + $0x20] sm:$0xff] }
 0x2e8   :  { %1354 = vmatmul.mubr.msk.f32.vlgmr.msra.gmra.mxu1 %vm277_vm2, %v180_v6  ;;  %1356 = vmatprep.subr.mxu1 %v1705_v20 }
 0x2e9   :  { %1360 = vmatprep.mubr.msk.f32.mxu1 %vm1706_vm4, %v1705_v20 }
 0x3a8   :  { %v1355_v31 = vpop.f32.mrf.mxu1 }
 0x3a9   :  { %v526_v32 = vadd.f32 %v1355_v31, %v1246_v30  ;;  %v1259_v31 = vld [vmem:[#allocation18] ss:$0 sm:$0xff] }
 0x3aa   :  { %v520_v33 = vpop.f32.mrf.mxu1 }
 0x3ab   :  { %v530_v35 = vmax.f32 %v526_v32, 0.0  ;;  %v521_v36 = vadd.f32 %v1246_v30, %v520_v33  ;;  %v1261_v33 = vld [vmem:[%s2062_s18] ss:$0 sm:$0xff]  ;;  %s1659_s18 = scalar_lea.vmem %s1226_s2, 32 }
 0x3ac   :  { %p1660_p8 = scmp.ne.s32.totalorder %s1226_s2, %s1659_s18  ;;  %p1665_p10 = scmp.lt.s32.totalorder %s1659_s18, %s1659_s18 }
 0x3ad   :  { %v529_v37 = vmax.f32 %v521_v36, 0.0  ;;  %1357 = vmatpush3.msra.mxu1 %v530_v35 }
 0x3ae   :  { %1358 = vmatprep.subr.mxu1 %v1705_v20  ;;  %p1666_p11 = por %p1665_p10, %p1664_p9 }
 0x3af   :  { %1359 = vmatpush3.msra.mxu1 %v529_v37 }
 0x3b0   :  { %1361 = vmatmul.mubr.msk.f32.vlgmr.msra.gmra.mxu1 %vm277_vm2, %v546_v38  ;;  %1374 = vmatprep.subr.mxu1 %v1705_v20  ;;  %p1667_p12 = pnand %p1666_p11, %p1660_p8 }
 0x3b1   :  { %1386 = vmatprep.mubr.msk.f32.mxu1 %vm1706_vm4, %v1705_v20  ;;  %1375 = vmatpush3.msra.mxu1 %v710_v39 }
 0x3b2   :  { %1376 = vmatprep.subr.mxu1 %v1705_v20 }
 0x3b3   :  { %1377 = vmatpush3.msra.mxu1 %v709_v40 }
 0x3b4   :  { %1378 = vmatprep.subr.mxu1 %v1705_v20 }
 0x3b5   :  { %1379 = vmatpush3.msra.mxu1 %v708_v41 }
 0x3b6   :  { %1380 = vmatprep.subr.mxu1 %v1705_v20 }
 0x3b7   :  { %1381 = vmatpush3.msra.mxu1 %v707_v48 }
 0x3b8   :  { %1382 = vmatprep.subr.mxu1 %v1705_v20 }
 0x3b9   :  { %1383 = vmatpush3.msra.mxu1 %v706_v49 }
 0x3ba   :  { %1384 = vmatprep.subr.mxu1 %v1705_v20 }
 0x3bb   :  { %1385 = vmatpush3.msra.mxu1 %v705_v50 }
 0x3bc   :  { %1400 = vmatprep.subr.mxu1 %v1705_v20 }
 0x470   :  { %v616_v43 = vpop.f32.mrf.mxu1 }
 0x471   :  { %1372 = vmatmul.mubr.msk.f32.vlgmr.msra.gmra.mxu0 %vm365_vm3, %v616_v43 }
 0x472   :  { %1390 = vmatpush3.msra.mxu0 %v796_v42  ;;  %v1362_v45 = vpop.f32.mrf.mxu1  ;;  %1397 = vmatprep.mubr.msk.f32.mxu0 %vm1706_vm4, %v1705_v20 }
 0x473   :  { %1391 = vmatprep.subr.mxu0 %v1705_v20 }
 0x474   :  { %1392 = vmatpush3.msra.mxu0 %v795_v44 }
 0x475   :  { %1393 = vmatprep.subr.mxu0 %v1705_v20 }
 0x476   :  { %1394 = vmatpush3.msra.mxu0 %v794_v46 }
 0x477   :  { %1395 = vmatprep.subr.mxu0 %v1705_v20 }
 0x478   :  { %1396 = vmatpush3.msra.mxu0 %v793_v47 }
 0x479   :  { %1398 = vmatmul.mubr.msk.f32.vlgmr.msra.gmra.mxu0 %vm365_vm3, %v616_v43  ;;  %1415 = vmatprep.subr.mxu0 %v1705_v20 }
 0x47a   :  { %1423 = vmatprep.mubr.msk.f32.mxu0 %vm1706_vm4, %v1705_v20  ;;  %1416 = vmatpush3.msra.mxu0 %v966_v0 }
 0x47b   :  { %1417 = vmatprep.subr.mxu0 %v1705_v20 }
 0x47c   :  { %1418 = vmatpush3.msra.mxu0 %v965_v1 }
 0x47d   :  { %1419 = vmatprep.subr.mxu0 %v1705_v20 }
 0x47e   :  { %1420 = vmatpush3.msra.mxu0 %v964_v11 }
 0x47f   :  { %1421 = vmatprep.subr.mxu0 %v1705_v20 }
 0x480   :  { %1422 = vmatpush3.msra.mxu0 %v963_v12 }
 0x481   :  { %1426 = vmatprep.subr.mxu0 %v1705_v20 }
 0x531   :  { %v700_v52 = vpop.f32.mrf.mxu0 }
 0x532   :  { %v701_v53 = vadd.f32 %v1251_v51, %v700_v52 }
 0x533   :  { %v1373_v54 = vpop.f32.mrf.mxu0 }
 0x534   :  { %v704_v55 = vmax.f32 %v701_v53, 0.0 }
 0x536   :  { %1387 = vmatmul.mubr.msk.f32.vlgmr.msra.gmra.mxu1 %vm718_vm11, %v704_v55 }
 0x537   :  { %1401 = vmatpush3.msra.mxu1 %v881_v56  ;;  %1412 = vmatprep.mubr.msk.f32.mxu1 %vm1706_vm4, %v1705_v20 }
 0x538   :  { %1402 = vmatprep.subr.mxu1 %v1705_v20 }
 0x539   :  { %v870_v57 = vpop.f32.mrf.mxu0  ;;  %1403 = vmatpush3.msra.mxu1 %v880_v59 }
 0x53a   :  { %1404 = vmatprep.subr.mxu1 %v1705_v20  ;;  %v871_v7 = vadd.f32 %v1255_v3, %v870_v57 }
 0x53b   :  { %v1399_v58 = vpop.f32.mrf.mxu0  ;;  %1405 = vmatpush3.msra.mxu1 %v879_v60 }
 0x53c   :  { %1406 = vmatprep.subr.mxu1 %v1705_v20 }
 0x53d   :  { %1407 = vmatpush3.msra.mxu1 %v878_v61 }
 0x53e   :  { %1408 = vmatprep.subr.mxu1 %v1705_v20 }
 0x53f   :  { %1409 = vmatpush3.msra.mxu1 %v877_v62 }
 0x540   :  { %1410 = vmatprep.subr.mxu1 %v1705_v20 }
 0x541   :  { %1411 = vmatpush3.msra.mxu1 %v876_v63 }
 0x542   :  { %1441 = vmatprep.subr.mxu1 %v1705_v20 }
 0x5f6   :  { %v788_v4 = vpop.f32.mrf.mxu1 }
 0x5f7   :  { %v789_v5 = vadd.f32 %v1253_v2, %v788_v4 }
 0x5f8   :  { %v1388_v6 = vpop.f32.mrf.mxu1 }
 0x5f9   :  { %v792_v8 = vmax.f32 %v789_v5, 0.0 }
 0x5fb   :  { %v874_v9 = vadd.f32 %v871_v7, %v792_v8 }
 0x5fd   :  { %v875_v10 = vmax.f32 %v874_v9, 0.0 }
 0x5ff   :  { %1413 = vmatmul.mubr.msk.f32.vlgmr.msra.gmra.mxu1 %vm718_vm11, %v875_v10 }
 0x600   :  { %1449 = vmatprep.mubr.msk.f32.mxu1 %vm1706_vm4, %v1705_v20  ;;  %1442 = vmatpush3.msra.mxu1 %v1136_v25 }
 0x601   :  { %1443 = vmatprep.subr.mxu1 %v1705_v20 }
 0x602   :  { %1444 = vmatpush3.msra.mxu1 %v1135_v26 }
 0x603   :  { %1445 = vmatprep.subr.mxu1 %v1705_v20 }
 0x604   :  { %1446 = vmatpush3.msra.mxu1 %v1134_v27 }
 0x605   :  { %1447 = vmatprep.subr.mxu1 %v1705_v20 }
 0x606   :  { %1448 = vmatpush3.msra.mxu1 %v1133_v28 }
 0x6bf   :  { %v958_v14 = vpop.f32.mrf.mxu1 }
 0x6c0   :  { %v959_v15 = vadd.f32 %v1257_v13, %v958_v14 }
 0x6c1   :  { %v1414_v16 = vpop.f32.mrf.mxu1 }
 0x6c2   :  { %v962_v17 = vmax.f32 %v959_v15, 0.0 }
 0x6c4   :  { %1424 = vmatmul.mubr.msk.f32.vlgmr.msra.gmra.mxu0 %vm365_vm3, %v962_v17 }
 0x6c5   :  { %1427 = vmatpush3.msra.mxu0 %v1053_v18  ;;  %1438 = vmatprep.mubr.msk.f32.mxu0 %vm1706_vm4, %v1705_v20 }
 0x6c6   :  { %1428 = vmatprep.subr.mxu0 %v1705_v20 }
 0x6c7   :  { %1429 = vmatpush3.msra.mxu0 %v1052_v19 }
 0x6c8   :  { %1430 = vmatprep.subr.mxu0 %v1705_v20 }
 0x6c9   :  { %1431 = vmatpush3.msra.mxu0 %v1051_v21 }
 0x6ca   :  { %1432 = vmatprep.subr.mxu0 %v1705_v20 }
 0x6cb   :  { %1433 = vmatpush3.msra.mxu0 %v1050_v22 }
 0x6cc   :  { %1434 = vmatprep.subr.mxu0 %v1705_v20 }
 0x6cd   :  { %1435 = vmatpush3.msra.mxu0 %v1049_v23 }
 0x6ce   :  { %1436 = vmatprep.subr.mxu0 %v1705_v20  ;;  %v1263_v20 = vld [vmem:[%s2064_s20] ss:$0 sm:$0xff] }
 0x6cf   :  { %1437 = vmatpush3.msra.mxu0 %v1048_v24 }
 0x6d0   :  { %1439 = vmatmul.mubr.msk.f32.vlgmr.msra.gmra.mxu0 %vm718_vm11, %v875_v10 }
 0x784   :  { %v1043_v29 = vpop.f32.mrf.mxu0 }
 0x785   :  { %v1044_v32 = vadd.f32 %v1259_v31, %v1043_v29 }
 0x786   :  { %v1425_v30 = vpop.f32.mrf.mxu0 }
 0x787   :  { %v1047_v35 = vmax.f32 %v1044_v32, 0.0 }
 0x790   :  { %v1127_v34 = vpop.f32.mrf.mxu0 }
 0x791   :  { %v1128_v36 = vadd.f32 %v1261_v33, %v1127_v34 }
 0x792   :  { %v1440_v37 = vpop.f32.mrf.mxu0 }
 0x793   :  { %v1131_v38 = vadd.f32 %v1128_v36, %v1047_v35 }
 0x795   :  { %v1132_v39 = vmax.f32 %v1131_v38, 0.0 }
 0x797   :  { %1450 = vmatmul.mubr.msk.f32.vlgmr.msra.gmra.mxu1 %vm365_vm3, %v1132_v39 }
 0x857   :  { %v1213_v40 = vpop.f32.mrf.mxu1 }
 0x858   :  { %v1214_v41 = vadd.f32 %v1263_v20, %v1213_v40 }
 0x859   :  { %v1451_v42 = vpop.f32.mrf.mxu1 }
 0x85a   :  { %1218 = vst.msk [vmem:[#allocation19] sm:$0x3] %vm1217_vm12, %v1214_v41 }
 0x85b   :  { %1670 = shalt.err (!%p1667_p12)
}
 0x85c   :  { %1228 = dma.vmem_to_hbm [thread:$0]  %s1226_s2, 32, %s2065_s21, [#allocation6]  }
 0x85d   :  { %1691 = dma.done.wait [#allocation6], 32  }
 0x85e   :  { %1692 = vsyncadd [#allocation6], 4294967264 }
 0x85f   :  { %1232 = vsyncpa [#allocation5], 1 }
 0x860   :  { %1233 = vsyncpa [#allocation8], 1 }
 0x861   :  { %1234 = vsyncpa [#allocation11], 1 }
 0x862   :  { %1235 = vsyncpa [#allocation14], 1 }
 0x863   :  { %1236 = vsyncpa [#allocation17], 1 }
 0x864   :  { %1237 = vsyncpa [#allocation6], 1 }

</bundles_post_ra>
